<compile_context>
chip_gen: v5e
topology: v5e:2x2
jax: 0.10.0
libtpu: 0.0.40
codegen_flags: <defaults>
</compile_context>

<pallas_src>
import jax
import jax.numpy as jnp
from jax.experimental import pallas as pl
from jax.experimental.pallas import tpu as pltpu

# pywt.Wavelet('sym6').filter_bank = (dec_lo, dec_hi, rec_lo, rec_hi); the module
# uses the third entry (rec_lo).  Hardcoded deterministically (no pywt at runtime).
_SYM6_DEC_LO = (
    0.015404109327027373, 0.0034907120842174702, -0.11799011114819057,
    -0.048311742585633, 0.4910559419267466, 0.787641141030194,
    0.3379294217276218, -0.07263752278646252, -0.021060292512300564,
    0.04472490177066578, 0.0017677118642428036, -0.007800708325034148,
)
SYM6_REC_LO = tuple(reversed(_SYM6_DEC_LO))

FILTER_LEN = len(SYM6_REC_LO)          # 12
UP = 1
DOWN = 2
PAD = (FILTER_LEN - UP) // 2           # 5
_A = FILTER_LEN // DOWN                # 6 taps per polyphase component


def _ceil_to(v, m):
    return -(-v // m) * m


def _make_hpf_kernel(hf, th, w_out, tb, needs_cast):
    """Fused separable polyphase kernel.  hf = flipped 1D taps (baked floats)."""
    a = _A
    wob = w_out * tb

    def kernel(x_ref, o_ref):
        # x_ref: (1, 1, 2, 2, th + a - 1, pw * tb)
        #   x_ref[0, 0, px, py, r, q*tb + c] = x_padded[2*(m0 + r) + py, 2*q + px, c]
        #   (m0 = this strip's first output row, c = channel within the tile)
        # o_ref: (1, th, w_out * tb)
        acc = None
        for px in range(DOWN):
            # Column pass (H filter + down-2) for this W phase.  Each tap is a
            # sublane-offset ref read (pure addressing) -- no slab preloads.
            t = None
            for py in range(DOWN):
                if needs_cast:
                    slab = x_ref[0, 0, px, py, :, :].astype(jnp.float32)
                for ay in range(a):
                    xs = (slab[ay:ay + th, :] if needs_cast
                          else x_ref[0, 0, px, py, ay:ay + th, :])
                    term = xs * hf[DOWN * ay + py]
                    t = term if t is None else t + term
            # Row pass (W filter + down-2), fused per W phase so only one
            # (th, pw*tb) intermediate is live at a time.  Lane slices sit at
            # offsets ax*tb (128-aligned => free whenever tb == 128).
            for ax in range(a):
                seg = t[:, ax * tb: ax * tb + wob] * hf[DOWN * ax + px]
                acc = seg if acc is None else acc + seg
        o_ref[0, :, :] = acc.astype(o_ref.dtype)

    return kernel


def _pick_tiles(h_out, pw, b, itemsize):
    """Choose channel tile tb, H-strip rows th, and grid extents (nb, ns)."""
    if b >= 128:
        tb = 128
    else:
        tb = max(8, _ceil_to(b, 8))
    # Guard against pathologically wide rows blowing VMEM even at th=8.
    while tb > 8 and DOWN * DOWN * (8 + _A - 1) * pw * tb * itemsize > 16 * 1024 * 1024:
        tb = max(8, _ceil_to(tb // 2, 8))
    nb = -(-b // tb)

    # Largest th (multiple of 8) whose double-buffered input block stays within
    # ~8 MiB per buffer; capped so big images still get >= 2 strips (occupancy,
    # v7x megacore, DMA/compute overlap).
    bytes_per_ph_row = DOWN * DOWN * pw * tb * itemsize
    max_rows = max(_A + 3, (8 * 1024 * 1024) // bytes_per_ph_row)   # th + 5 rows
    th = max(8, ((max_rows - (_A - 1)) // 8) * 8)
    if h_out > 8:
        th = min(th, _ceil_to(-(-h_out // 2), 8))
    th = min(th, _ceil_to(h_out, 8))
    ns = -(-h_out // th)
    return tb, th, nb, ns


def high_pass_filter(x, h1d=SYM6_REC_LO, up=UP, down=DOWN):
    """Equivalent of upfirdn2d(x, h1d ⊗ h1d, up=1, down=2, pad=(PAD, PAD))."""
    assert up == 1 and down == 2, "kernel specialized for up=1, down=2"
    n, c, h, w = x.shape
    L = len(h1d)
    a = L // down
    pad = (L - up) // 2

    # Convolution with k = h⊗h == cross-correlation with the flipped taps,
    # baked as Python float immediates (rank-1 / fixed-wavelet assumption).
    hf = tuple(float(h1d[L - 1 - k]) for k in range(L))

    h_out = (h + 2 * pad - L) // down + 1
    w_out = (w + 2 * pad - L) // down + 1
    pw = w_out + a - 1

    b = n * c
    itemsize = jnp.dtype(x.dtype).itemsize
    tb, th, nb, ns = _pick_tiles(h_out, pw, b, itemsize)
    b_pad = nb * tb
    ph_s = th + a - 1            # PH rows per strip (5-row halo baked in)
    ph_tot = ns * th + a - 1     # PH rows of the whole padded image
    hp_rows = down * ph_tot
    wp_cols = down * pw
    lw = pw * tb                 # folded lane width of the kernel input
    wob = w_out * tb             # folded lane width of the kernel output

    # ---- host layout: one fused chain (channels-last + pad + phase split + fold).
    x_cl = jnp.transpose(x, (2, 3, 0, 1)).reshape(h, w, b)
    xp = jnp.pad(x_cl, ((pad, hp_rows - h - pad),
                        (pad, wp_cols - w - pad),
                        (0, b_pad - b)))
    x6 = xp.reshape(ph_tot, down, pw, down, nb, tb)
    x6 = jnp.transpose(x6, (4, 3, 1, 0, 2, 5))           # (nb, px, py, PH, pw, tb)
    # Overlapping H strips (5-row halo) gathered on the host so the kernel block
    # is a plain rectangular tile and BlockSpec auto-pipelining applies.
    rows = (jnp.arange(ns)[:, None] * th + jnp.arange(ph_s)[None, :]).reshape(-1)
    xs = jnp.take(x6, rows, axis=3)
    xs = xs.reshape(nb, down, down, ns, ph_s, pw, tb)
    xs = jnp.transpose(xs, (0, 3, 1, 2, 4, 5, 6)).reshape(nb, ns, down, down, ph_s, lw)
    # TODO(synk): for very wide images also tile pw (5-column halo), and replace
    # the host strip gather with in-kernel manual DMA (memory_space=pl.ANY +
    # make_async_copy) to drop the ~5/(th+5) halo re-read on mem-bound v5e.

    needs_cast = jnp.dtype(x.dtype) != jnp.dtype(jnp.float32)
    out = pl.pallas_call(
        _make_hpf_kernel(hf, th, w_out, tb, needs_cast),
        out_shape=jax.ShapeDtypeStruct((nb, ns * th, wob), x.dtype),
        grid_spec=pltpu.PrefetchScalarGridSpec(
            num_scalar_prefetch=0,
            grid=(nb, ns),
            in_specs=[pl.BlockSpec((1, 1, down, down, ph_s, lw),
                                   lambda ib, ih: (ib, ih, 0, 0, 0, 0))],
            out_specs=pl.BlockSpec((1, th, wob), lambda ib, ih: (ib, ih, 0)),
        ),
        compiler_params=pltpu.CompilerParams(
            dimension_semantics=("parallel", "parallel"),
            vmem_limit_bytes=48 * 1024 * 1024,   # safe on v5e/v6e/v7x; tiles sized well below
        ),
    )(xs)

    # Unfold: (nb, ns*th, w_out*tb) -> (N, C, h_out, w_out).
    out = out.reshape(nb, ns * th, w_out, tb)
    out = jnp.transpose(out, (0, 3, 1, 2)).reshape(b_pad, ns * th, w_out)
    out = out[:b, :h_out, :].reshape(n, c, h_out, w_out)
    return out


def upfirdn2d_reference(x, kernel2d, down, pad):
    """Pure-JAX reference (up=1 path): pad -> conv with flipped kernel -> downsample."""
    n, c, h, w = x.shape
    L = kernel2d.shape[0]
    xp = jnp.pad(x, ((0, 0), (0, 0), (pad, pad), (pad, pad)))
    kf = kernel2d[::-1, ::-1].astype(jnp.float32)
    wgt = jnp.broadcast_to(kf[None, None], (c, 1, L, L))
    y = jax.lax.conv_general_dilated(
        xp.astype(jnp.float32), wgt, window_strides=(down, down), padding="VALID",
        dimension_numbers=("NCHW", "OIHW", "NCHW"), feature_group_count=c)
    return y.astype(x.dtype)


if __name__ == "__main__":
    # Deterministic parameter init, mirroring the module:
    #   sym6 = tensor(rec_lo); self.sym6 = Parameter(sym6[None, :] * sym6[:, None])
    hvec = jnp.asarray(SYM6_REC_LO, dtype=jnp.float32)
    sym6_2d = hvec[None, :] * hvec[:, None]          # (12, 12)

    hpf = jax.jit(high_pass_filter)

    # Primary check: the module-sized example.
    x = jax.random.normal(jax.random.PRNGKey(0), (2, 4, 16, 16), dtype=jnp.float32)
    y = jax.block_until_ready(hpf(x))
    y_ref = upfirdn2d_reference(x, sym6_2d, DOWN, PAD)
    assert y.shape == (2, 4, 8, 8), y.shape
    assert jnp.allclose(y, y_ref, atol=1e-5, rtol=1e-5), "mismatch vs reference"

    # Secondary (still tiny) check: exercises multiple H strips, channel-tile
    # padding and the partial-last-strip path.
    x2 = jax.random.normal(jax.random.PRNGKey(1), (1, 6, 40, 18), dtype=jnp.float32)
    y2 = jax.block_until_ready(hpf(x2))
    y2_ref = upfirdn2d_reference(x2, sym6_2d, DOWN, PAD)
    assert y2.shape == y2_ref.shape, (y2.shape, y2_ref.shape)
    assert jnp.allclose(y2, y2_ref, atol=1e-5, rtol=1e-5), "mismatch vs reference (tiled)"

    print("KERNEL_OK")
</pallas_src>

<mosaic_0001>
module attributes {stable_mosaic.version = 11 : i64} {
  func.func @kernel(%arg0: i32, %arg1: i32, %arg2: memref<1x1x2x2x13x104xf32, #tpu.memory_space<vmem>>, %arg3: memref<1x8x64xf32, #tpu.memory_space<vmem>>) attributes {dimension_semantics = [#tpu.dimension_semantics<parallel>, #tpu.dimension_semantics<parallel>], iteration_bounds = array<i64: 1, 1>, scalar_prefetch = 0 : i64, scratch_operands = 0 : i64, tpu.core_type = #tpu.core_type<tc>, window_params = [{transform_indices = @transform_0, window_bounds = array<i64: 1, 1, 2, 2, 13, 104>}, {transform_indices = @transform_1, window_bounds = array<i64: 1, 8, 64>}]} {
    %c0 = arith.constant 0 : index
    %c0_0 = arith.constant 0 : index
    %c0_1 = arith.constant 0 : index
    %c0_2 = arith.constant 0 : index
    %c0_3 = arith.constant 0 : index
    %c0_4 = arith.constant 0 : index
    %0 = vector.load %arg2[%c0, %c0_0, %c0_1, %c0_2, %c0_3, %c0_4] : memref<1x1x2x2x13x104xf32, #tpu.memory_space<vmem>>, vector<1x1x1x1x8x104xf32>
    %1 = vector.shape_cast %0 : vector<1x1x1x1x8x104xf32> to vector<8x104xf32>
    %cst = arith.constant 0.0154041089 : f32
    %2 = vector.broadcast %cst : f32 to vector<8x104xf32>
    %3 = arith.mulf %1, %2 : vector<8x104xf32>
    %c0_5 = arith.constant 0 : index
    %c0_6 = arith.constant 0 : index
    %c0_7 = arith.constant 0 : index
    %c0_8 = arith.constant 0 : index
    %c1 = arith.constant 1 : index
    %c0_9 = arith.constant 0 : index
    %4 = vector.load %arg2[%c0_5, %c0_6, %c0_7, %c0_8, %c1, %c0_9] : memref<1x1x2x2x13x104xf32, #tpu.memory_space<vmem>>, vector<1x1x1x1x8x104xf32>
    %5 = vector.shape_cast %4 : vector<1x1x1x1x8x104xf32> to vector<8x104xf32>
    %cst_10 = arith.constant -0.117990114 : f32
    %6 = vector.broadcast %cst_10 : f32 to vector<8x104xf32>
    %7 = arith.mulf %5, %6 : vector<8x104xf32>
    %8 = arith.addf %3, %7 : vector<8x104xf32>
    %c0_11 = arith.constant 0 : index
    %c0_12 = arith.constant 0 : index
    %c0_13 = arith.constant 0 : index
    %c0_14 = arith.constant 0 : index
    %c2 = arith.constant 2 : index
    %c0_15 = arith.constant 0 : index
    %9 = vector.load %arg2[%c0_11, %c0_12, %c0_13, %c0_14, %c2, %c0_15] : memref<1x1x2x2x13x104xf32, #tpu.memory_space<vmem>>, vector<1x1x1x1x8x104xf32>
    %10 = vector.shape_cast %9 : vector<1x1x1x1x8x104xf32> to vector<8x104xf32>
    %cst_16 = arith.constant 0.491055936 : f32
    %11 = vector.broadcast %cst_16 : f32 to vector<8x104xf32>
    %12 = arith.mulf %10, %11 : vector<8x104xf32>
    %13 = arith.addf %8, %12 : vector<8x104xf32>
    %c0_17 = arith.constant 0 : index
    %c0_18 = arith.constant 0 : index
    %c0_19 = arith.constant 0 : index
    %c0_20 = arith.constant 0 : index
    %c3 = arith.constant 3 : index
    %c0_21 = arith.constant 0 : index
    %14 = vector.load %arg2[%c0_17, %c0_18, %c0_19, %c0_20, %c3, %c0_21] : memref<1x1x2x2x13x104xf32, #tpu.memory_space<vmem>>, vector<1x1x1x1x8x104xf32>
    %15 = vector.shape_cast %14 : vector<1x1x1x1x8x104xf32> to vector<8x104xf32>
    %cst_22 = arith.constant 0.337929428 : f32
    %16 = vector.broadcast %cst_22 : f32 to vector<8x104xf32>
    %17 = arith.mulf %15, %16 : vector<8x104xf32>
    %18 = arith.addf %13, %17 : vector<8x104xf32>
    %c0_23 = arith.constant 0 : index
    %c0_24 = arith.constant 0 : index
    %c0_25 = arith.constant 0 : index
    %c0_26 = arith.constant 0 : index
    %c4 = arith.constant 4 : index
    %c0_27 = arith.constant 0 : index
    %19 = vector.load %arg2[%c0_23, %c0_24, %c0_25, %c0_26, %c4, %c0_27] : memref<1x1x2x2x13x104xf32, #tpu.memory_space<vmem>>, vector<1x1x1x1x8x104xf32>
    %20 = vector.shape_cast %19 : vector<1x1x1x1x8x104xf32> to vector<8x104xf32>
    %cst_28 = arith.constant -0.0210602917 : f32
    %21 = vector.broadcast %cst_28 : f32 to vector<8x104xf32>
    %22 = arith.mulf %20, %21 : vector<8x104xf32>
    %23 = arith.addf %18, %22 : vector<8x104xf32>
    %c0_29 = arith.constant 0 : index
    %c0_30 = arith.constant 0 : index
    %c0_31 = arith.constant 0 : index
    %c0_32 = arith.constant 0 : index
    %c5 = arith.constant 5 : index
    %c0_33 = arith.constant 0 : index
    %24 = vector.load %arg2[%c0_29, %c0_30, %c0_31, %c0_32, %c5, %c0_33] : memref<1x1x2x2x13x104xf32, #tpu.memory_space<vmem>>, vector<1x1x1x1x8x104xf32>
    %25 = vector.shape_cast %24 : vector<1x1x1x1x8x104xf32> to vector<8x104xf32>
    %cst_34 = arith.constant 0.00176771183 : f32
    %26 = vector.broadcast %cst_34 : f32 to vector<8x104xf32>
    %27 = arith.mulf %25, %26 : vector<8x104xf32>
    %28 = arith.addf %23, %27 : vector<8x104xf32>
    %c0_35 = arith.constant 0 : index
    %c0_36 = arith.constant 0 : index
    %c0_37 = arith.constant 0 : index
    %c1_38 = arith.constant 1 : index
    %c0_39 = arith.constant 0 : index
    %c0_40 = arith.constant 0 : index
    %29 = vector.load %arg2[%c0_35, %c0_36, %c0_37, %c1_38, %c0_39, %c0_40] : memref<1x1x2x2x13x104xf32, #tpu.memory_space<vmem>>, vector<1x1x1x1x8x104xf32>
    %30 = vector.shape_cast %29 : vector<1x1x1x1x8x104xf32> to vector<8x104xf32>
    %cst_41 = arith.constant 0.00349071203 : f32
    %31 = vector.broadcast %cst_41 : f32 to vector<8x104xf32>
    %32 = arith.mulf %30, %31 : vector<8x104xf32>
    %33 = arith.addf %28, %32 : vector<8x104xf32>
    %c0_42 = arith.constant 0 : index
    %c0_43 = arith.constant 0 : index
    %c0_44 = arith.constant 0 : index
    %c1_45 = arith.constant 1 : index
    %c1_46 = arith.constant 1 : index
    %c0_47 = arith.constant 0 : index
    %34 = vector.load %arg2[%c0_42, %c0_43, %c0_44, %c1_45, %c1_46, %c0_47] : memref<1x1x2x2x13x104xf32, #tpu.memory_space<vmem>>, vector<1x1x1x1x8x104xf32>
    %35 = vector.shape_cast %34 : vector<1x1x1x1x8x104xf32> to vector<8x104xf32>
    %cst_48 = arith.constant -0.0483117439 : f32
    %36 = vector.broadcast %cst_48 : f32 to vector<8x104xf32>
    %37 = arith.mulf %35, %36 : vector<8x104xf32>
    %38 = arith.addf %33, %37 : vector<8x104xf32>
    %c0_49 = arith.constant 0 : index
    %c0_50 = arith.constant 0 : index
    %c0_51 = arith.constant 0 : index
    %c1_52 = arith.constant 1 : index
    %c2_53 = arith.constant 2 : index
    %c0_54 = arith.constant 0 : index
    %39 = vector.load %arg2[%c0_49, %c0_50, %c0_51, %c1_52, %c2_53, %c0_54] : memref<1x1x2x2x13x104xf32, #tpu.memory_space<vmem>>, vector<1x1x1x1x8x104xf32>
    %40 = vector.shape_cast %39 : vector<1x1x1x1x8x104xf32> to vector<8x104xf32>
    %cst_55 = arith.constant 0.787641167 : f32
    %41 = vector.broadcast %cst_55 : f32 to vector<8x104xf32>
    %42 = arith.mulf %40, %41 : vector<8x104xf32>
    %43 = arith.addf %38, %42 : vector<8x104xf32>
    %c0_56 = arith.constant 0 : index
    %c0_57 = arith.constant 0 : index
    %c0_58 = arith.constant 0 : index
    %c1_59 = arith.constant 1 : index
    %c3_60 = arith.constant 3 : index
    %c0_61 = arith.constant 0 : index
    %44 = vector.load %arg2[%c0_56, %c0_57, %c0_58, %c1_59, %c3_60, %c0_61] : memref<1x1x2x2x13x104xf32, #tpu.memory_space<vmem>>, vector<1x1x1x1x8x104xf32>
    %45 = vector.shape_cast %44 : vector<1x1x1x1x8x104xf32> to vector<8x104xf32>
    %cst_62 = arith.constant -0.0726375207 : f32
    %46 = vector.broadcast %cst_62 : f32 to vector<8x104xf32>
    %47 = arith.mulf %45, %46 : vector<8x104xf32>
    %48 = arith.addf %43, %47 : vector<8x104xf32>
    %c0_63 = arith.constant 0 : index
    %c0_64 = arith.constant 0 : index
    %c0_65 = arith.constant 0 : index
    %c1_66 = arith.constant 1 : index
    %c4_67 = arith.constant 4 : index
    %c0_68 = arith.constant 0 : index
    %49 = vector.load %arg2[%c0_63, %c0_64, %c0_65, %c1_66, %c4_67, %c0_68] : memref<1x1x2x2x13x104xf32, #tpu.memory_space<vmem>>, vector<1x1x1x1x8x104xf32>
    %50 = vector.shape_cast %49 : vector<1x1x1x1x8x104xf32> to vector<8x104xf32>
    %cst_69 = arith.constant 4.472490e-02 : f32
    %51 = vector.broadcast %cst_69 : f32 to vector<8x104xf32>
    %52 = arith.mulf %50, %51 : vector<8x104xf32>
    %53 = arith.addf %48, %52 : vector<8x104xf32>
    %c0_70 = arith.constant 0 : index
    %c0_71 = arith.constant 0 : index
    %c0_72 = arith.constant 0 : index
    %c1_73 = arith.constant 1 : index
    %c5_74 = arith.constant 5 : index
    %c0_75 = arith.constant 0 : index
    %54 = vector.load %arg2[%c0_70, %c0_71, %c0_72, %c1_73, %c5_74, %c0_75] : memref<1x1x2x2x13x104xf32, #tpu.memory_space<vmem>>, vector<1x1x1x1x8x104xf32>
    %55 = vector.shape_cast %54 : vector<1x1x1x1x8x104xf32> to vector<8x104xf32>
    %cst_76 = arith.constant -0.00780070852 : f32
    %56 = vector.broadcast %cst_76 : f32 to vector<8x104xf32>
    %57 = arith.mulf %55, %56 : vector<8x104xf32>
    %58 = arith.addf %53, %57 : vector<8x104xf32>
    %59 = vector.extract_strided_slice %58 {offsets = [0, 0], sizes = [8, 64], strides = [1, 1]} : vector<8x104xf32> to vector<8x64xf32>
    %cst_77 = arith.constant 0.0154041089 : f32
    %60 = vector.broadcast %cst_77 : f32 to vector<8x64xf32>
    %61 = arith.mulf %59, %60 : vector<8x64xf32>
    %62 = vector.extract_strided_slice %58 {offsets = [0, 8], sizes = [8, 64], strides = [1, 1]} : vector<8x104xf32> to vector<8x64xf32>
    %cst_78 = arith.constant -0.117990114 : f32
    %63 = vector.broadcast %cst_78 : f32 to vector<8x64xf32>
    %64 = arith.mulf %62, %63 : vector<8x64xf32>
    %65 = arith.addf %61, %64 : vector<8x64xf32>
    %66 = vector.extract_strided_slice %58 {offsets = [0, 16], sizes = [8, 64], strides = [1, 1]} : vector<8x104xf32> to vector<8x64xf32>
    %cst_79 = arith.constant 0.491055936 : f32
    %67 = vector.broadcast %cst_79 : f32 to vector<8x64xf32>
    %68 = arith.mulf %66, %67 : vector<8x64xf32>
    %69 = arith.addf %65, %68 : vector<8x64xf32>
    %70 = vector.extract_strided_slice %58 {offsets = [0, 24], sizes = [8, 64], strides = [1, 1]} : vector<8x104xf32> to vector<8x64xf32>
    %cst_80 = arith.constant 0.337929428 : f32
    %71 = vector.broadcast %cst_80 : f32 to vector<8x64xf32>
    %72 = arith.mulf %70, %71 : vector<8x64xf32>
    %73 = arith.addf %69, %72 : vector<8x64xf32>
    %74 = vector.extract_strided_slice %58 {offsets = [0, 32], sizes = [8, 64], strides = [1, 1]} : vector<8x104xf32> to vector<8x64xf32>
    %cst_81 = arith.constant -0.0210602917 : f32
    %75 = vector.broadcast %cst_81 : f32 to vector<8x64xf32>
    %76 = arith.mulf %74, %75 : vector<8x64xf32>
    %77 = arith.addf %73, %76 : vector<8x64xf32>
    %78 = vector.extract_strided_slice %58 {offsets = [0, 40], sizes = [8, 64], strides = [1, 1]} : vector<8x104xf32> to vector<8x64xf32>
    %cst_82 = arith.constant 0.00176771183 : f32
    %79 = vector.broadcast %cst_82 : f32 to vector<8x64xf32>
    %80 = arith.mulf %78, %79 : vector<8x64xf32>
    %81 = arith.addf %77, %80 : vector<8x64xf32>
    %c0_83 = arith.constant 0 : index
    %c0_84 = arith.constant 0 : index
    %c1_85 = arith.constant 1 : index
    %c0_86 = arith.constant 0 : index
    %c0_87 = arith.constant 0 : index
    %c0_88 = arith.constant 0 : index
    %82 = vector.load %arg2[%c0_83, %c0_84, %c1_85, %c0_86, %c0_87, %c0_88] : memref<1x1x2x2x13x104xf32, #tpu.memory_space<vmem>>, vector<1x1x1x1x8x104xf32>
    %83 = vector.shape_cast %82 : vector<1x1x1x1x8x104xf32> to vector<8x104xf32>
    %cst_89 = arith.constant 0.0154041089 : f32
    %84 = vector.broadcast %cst_89 : f32 to vector<8x104xf32>
    %85 = arith.mulf %83, %84 : vector<8x104xf32>
    %c0_90 = arith.constant 0 : index
    %c0_91 = arith.constant 0 : index
    %c1_92 = arith.constant 1 : index
    %c0_93 = arith.constant 0 : index
    %c1_94 = arith.constant 1 : index
    %c0_95 = arith.constant 0 : index
    %86 = vector.load %arg2[%c0_90, %c0_91, %c1_92, %c0_93, %c1_94, %c0_95] : memref<1x1x2x2x13x104xf32, #tpu.memory_space<vmem>>, vector<1x1x1x1x8x104xf32>
    %87 = vector.shape_cast %86 : vector<1x1x1x1x8x104xf32> to vector<8x104xf32>
    %cst_96 = arith.constant -0.117990114 : f32
    %88 = vector.broadcast %cst_96 : f32 to vector<8x104xf32>
    %89 = arith.mulf %87, %88 : vector<8x104xf32>
    %90 = arith.addf %85, %89 : vector<8x104xf32>
    %c0_97 = arith.constant 0 : index
    %c0_98 = arith.constant 0 : index
    %c1_99 = arith.constant 1 : index
    %c0_100 = arith.constant 0 : index
    %c2_101 = arith.constant 2 : index
    %c0_102 = arith.constant 0 : index
    %91 = vector.load %arg2[%c0_97, %c0_98, %c1_99, %c0_100, %c2_101, %c0_102] : memref<1x1x2x2x13x104xf32, #tpu.memory_space<vmem>>, vector<1x1x1x1x8x104xf32>
    %92 = vector.shape_cast %91 : vector<1x1x1x1x8x104xf32> to vector<8x104xf32>
    %cst_103 = arith.constant 0.491055936 : f32
    %93 = vector.broadcast %cst_103 : f32 to vector<8x104xf32>
    %94 = arith.mulf %92, %93 : vector<8x104xf32>
    %95 = arith.addf %90, %94 : vector<8x104xf32>
    %c0_104 = arith.constant 0 : index
    %c0_105 = arith.constant 0 : index
    %c1_106 = arith.constant 1 : index
    %c0_107 = arith.constant 0 : index
    %c3_108 = arith.constant 3 : index
    %c0_109 = arith.constant 0 : index
    %96 = vector.load %arg2[%c0_104, %c0_105, %c1_106, %c0_107, %c3_108, %c0_109] : memref<1x1x2x2x13x104xf32, #tpu.memory_space<vmem>>, vector<1x1x1x1x8x104xf32>
    %97 = vector.shape_cast %96 : vector<1x1x1x1x8x104xf32> to vector<8x104xf32>
    %cst_110 = arith.constant 0.337929428 : f32
    %98 = vector.broadcast %cst_110 : f32 to vector<8x104xf32>
    %99 = arith.mulf %97, %98 : vector<8x104xf32>
    %100 = arith.addf %95, %99 : vector<8x104xf32>
    %c0_111 = arith.constant 0 : index
    %c0_112 = arith.constant 0 : index
    %c1_113 = arith.constant 1 : index
    %c0_114 = arith.constant 0 : index
    %c4_115 = arith.constant 4 : index
    %c0_116 = arith.constant 0 : index
    %101 = vector.load %arg2[%c0_111, %c0_112, %c1_113, %c0_114, %c4_115, %c0_116] : memref<1x1x2x2x13x104xf32, #tpu.memory_space<vmem>>, vector<1x1x1x1x8x104xf32>
    %102 = vector.shape_cast %101 : vector<1x1x1x1x8x104xf32> to vector<8x104xf32>
    %cst_117 = arith.constant -0.0210602917 : f32
    %103 = vector.broadcast %cst_117 : f32 to vector<8x104xf32>
    %104 = arith.mulf %102, %103 : vector<8x104xf32>
    %105 = arith.addf %100, %104 : vector<8x104xf32>
    %c0_118 = arith.constant 0 : index
    %c0_119 = arith.constant 0 : index
    %c1_120 = arith.constant 1 : index
    %c0_121 = arith.constant 0 : index
    %c5_122 = arith.constant 5 : index
    %c0_123 = arith.constant 0 : index
    %106 = vector.load %arg2[%c0_118, %c0_119, %c1_120, %c0_121, %c5_122, %c0_123] : memref<1x1x2x2x13x104xf32, #tpu.memory_space<vmem>>, vector<1x1x1x1x8x104xf32>
    %107 = vector.shape_cast %106 : vector<1x1x1x1x8x104xf32> to vector<8x104xf32>
    %cst_124 = arith.constant 0.00176771183 : f32
    %108 = vector.broadcast %cst_124 : f32 to vector<8x104xf32>
    %109 = arith.mulf %107, %108 : vector<8x104xf32>
    %110 = arith.addf %105, %109 : vector<8x104xf32>
    %c0_125 = arith.constant 0 : index
    %c0_126 = arith.constant 0 : index
    %c1_127 = arith.constant 1 : index
    %c1_128 = arith.constant 1 : index
    %c0_129 = arith.constant 0 : index
    %c0_130 = arith.constant 0 : index
    %111 = vector.load %arg2[%c0_125, %c0_126, %c1_127, %c1_128, %c0_129, %c0_130] : memref<1x1x2x2x13x104xf32, #tpu.memory_space<vmem>>, vector<1x1x1x1x8x104xf32>
    %112 = vector.shape_cast %111 : vector<1x1x1x1x8x104xf32> to vector<8x104xf32>
    %cst_131 = arith.constant 0.00349071203 : f32
    %113 = vector.broadcast %cst_131 : f32 to vector<8x104xf32>
    %114 = arith.mulf %112, %113 : vector<8x104xf32>
    %115 = arith.addf %110, %114 : vector<8x104xf32>
    %c0_132 = arith.constant 0 : index
    %c0_133 = arith.constant 0 : index
    %c1_134 = arith.constant 1 : index
    %c1_135 = arith.constant 1 : index
    %c1_136 = arith.constant 1 : index
    %c0_137 = arith.constant 0 : index
    %116 = vector.load %arg2[%c0_132, %c0_133, %c1_134, %c1_135, %c1_136, %c0_137] : memref<1x1x2x2x13x104xf32, #tpu.memory_space<vmem>>, vector<1x1x1x1x8x104xf32>
    %117 = vector.shape_cast %116 : vector<1x1x1x1x8x104xf32> to vector<8x104xf32>
    %cst_138 = arith.constant -0.0483117439 : f32
    %118 = vector.broadcast %cst_138 : f32 to vector<8x104xf32>
    %119 = arith.mulf %117, %118 : vector<8x104xf32>
    %120 = arith.addf %115, %119 : vector<8x104xf32>
    %c0_139 = arith.constant 0 : index
    %c0_140 = arith.constant 0 : index
    %c1_141 = arith.constant 1 : index
    %c1_142 = arith.constant 1 : index
    %c2_143 = arith.constant 2 : index
    %c0_144 = arith.constant 0 : index
    %121 = vector.load %arg2[%c0_139, %c0_140, %c1_141, %c1_142, %c2_143, %c0_144] : memref<1x1x2x2x13x104xf32, #tpu.memory_space<vmem>>, vector<1x1x1x1x8x104xf32>
    %122 = vector.shape_cast %121 : vector<1x1x1x1x8x104xf32> to vector<8x104xf32>
    %cst_145 = arith.constant 0.787641167 : f32
    %123 = vector.broadcast %cst_145 : f32 to vector<8x104xf32>
    %124 = arith.mulf %122, %123 : vector<8x104xf32>
    %125 = arith.addf %120, %124 : vector<8x104xf32>
    %c0_146 = arith.constant 0 : index
    %c0_147 = arith.constant 0 : index
    %c1_148 = arith.constant 1 : index
    %c1_149 = arith.constant 1 : index
    %c3_150 = arith.constant 3 : index
    %c0_151 = arith.constant 0 : index
    %126 = vector.load %arg2[%c0_146, %c0_147, %c1_148, %c1_149, %c3_150, %c0_151] : memref<1x1x2x2x13x104xf32, #tpu.memory_space<vmem>>, vector<1x1x1x1x8x104xf32>
    %127 = vector.shape_cast %126 : vector<1x1x1x1x8x104xf32> to vector<8x104xf32>
    %cst_152 = arith.constant -0.0726375207 : f32
    %128 = vector.broadcast %cst_152 : f32 to vector<8x104xf32>
    %129 = arith.mulf %127, %128 : vector<8x104xf32>
    %130 = arith.addf %125, %129 : vector<8x104xf32>
    %c0_153 = arith.constant 0 : index
    %c0_154 = arith.constant 0 : index
    %c1_155 = arith.constant 1 : index
    %c1_156 = arith.constant 1 : index
    %c4_157 = arith.constant 4 : index
    %c0_158 = arith.constant 0 : index
    %131 = vector.load %arg2[%c0_153, %c0_154, %c1_155, %c1_156, %c4_157, %c0_158] : memref<1x1x2x2x13x104xf32, #tpu.memory_space<vmem>>, vector<1x1x1x1x8x104xf32>
    %132 = vector.shape_cast %131 : vector<1x1x1x1x8x104xf32> to vector<8x104xf32>
    %cst_159 = arith.constant 4.472490e-02 : f32
    %133 = vector.broadcast %cst_159 : f32 to vector<8x104xf32>
    %134 = arith.mulf %132, %133 : vector<8x104xf32>
    %135 = arith.addf %130, %134 : vector<8x104xf32>
    %c0_160 = arith.constant 0 : index
    %c0_161 = arith.constant 0 : index
    %c1_162 = arith.constant 1 : index
    %c1_163 = arith.constant 1 : index
    %c5_164 = arith.constant 5 : index
    %c0_165 = arith.constant 0 : index
    %136 = vector.load %arg2[%c0_160, %c0_161, %c1_162, %c1_163, %c5_164, %c0_165] : memref<1x1x2x2x13x104xf32, #tpu.memory_space<vmem>>, vector<1x1x1x1x8x104xf32>
    %137 = vector.shape_cast %136 : vector<1x1x1x1x8x104xf32> to vector<8x104xf32>
    %cst_166 = arith.constant -0.00780070852 : f32
    %138 = vector.broadcast %cst_166 : f32 to vector<8x104xf32>
    %139 = arith.mulf %137, %138 : vector<8x104xf32>
    %140 = arith.addf %135, %139 : vector<8x104xf32>
    %141 = vector.extract_strided_slice %140 {offsets = [0, 0], sizes = [8, 64], strides = [1, 1]} : vector<8x104xf32> to vector<8x64xf32>
    %cst_167 = arith.constant 0.00349071203 : f32
    %142 = vector.broadcast %cst_167 : f32 to vector<8x64xf32>
    %143 = arith.mulf %141, %142 : vector<8x64xf32>
    %144 = arith.addf %81, %143 : vector<8x64xf32>
    %145 = vector.extract_strided_slice %140 {offsets = [0, 8], sizes = [8, 64], strides = [1, 1]} : vector<8x104xf32> to vector<8x64xf32>
    %cst_168 = arith.constant -0.0483117439 : f32
    %146 = vector.broadcast %cst_168 : f32 to vector<8x64xf32>
    %147 = arith.mulf %145, %146 : vector<8x64xf32>
    %148 = arith.addf %144, %147 : vector<8x64xf32>
    %149 = vector.extract_strided_slice %140 {offsets = [0, 16], sizes = [8, 64], strides = [1, 1]} : vector<8x104xf32> to vector<8x64xf32>
    %cst_169 = arith.constant 0.787641167 : f32
    %150 = vector.broadcast %cst_169 : f32 to vector<8x64xf32>
    %151 = arith.mulf %149, %150 : vector<8x64xf32>
    %152 = arith.addf %148, %151 : vector<8x64xf32>
    %153 = vector.extract_strided_slice %140 {offsets = [0, 24], sizes = [8, 64], strides = [1, 1]} : vector<8x104xf32> to vector<8x64xf32>
    %cst_170 = arith.constant -0.0726375207 : f32
    %154 = vector.broadcast %cst_170 : f32 to vector<8x64xf32>
    %155 = arith.mulf %153, %154 : vector<8x64xf32>
    %156 = arith.addf %152, %155 : vector<8x64xf32>
    %157 = vector.extract_strided_slice %140 {offsets = [0, 32], sizes = [8, 64], strides = [1, 1]} : vector<8x104xf32> to vector<8x64xf32>
    %cst_171 = arith.constant 4.472490e-02 : f32
    %158 = vector.broadcast %cst_171 : f32 to vector<8x64xf32>
    %159 = arith.mulf %157, %158 : vector<8x64xf32>
    %160 = arith.addf %156, %159 : vector<8x64xf32>
    %161 = vector.extract_strided_slice %140 {offsets = [0, 40], sizes = [8, 64], strides = [1, 1]} : vector<8x104xf32> to vector<8x64xf32>
    %cst_172 = arith.constant -0.00780070852 : f32
    %162 = vector.broadcast %cst_172 : f32 to vector<8x64xf32>
    %163 = arith.mulf %161, %162 : vector<8x64xf32>
    %164 = arith.addf %160, %163 : vector<8x64xf32>
    %c0_173 = arith.constant 0 : index
    %c0_174 = arith.constant 0 : index
    %c0_175 = arith.constant 0 : index
    %165 = vector.load %arg3[%c0_173, %c0_174, %c0_175] : memref<1x8x64xf32, #tpu.memory_space<vmem>>, vector<1x8x64xf32>
    %166 = vector.shape_cast %165 : vector<1x8x64xf32> to vector<8x64xf32>
    %167 = vector.shape_cast %164 : vector<8x64xf32> to vector<1x8x64xf32>
    tpu.vector_store %arg3[%c0_173, %c0_174, %c0_175], %167 {strides = array<i32>} : memref<1x8x64xf32, #tpu.memory_space<vmem>>, vector<1x8x64xf32>,
    return
  }
  func.func @transform_0(%arg0: i32, %arg1: i32) -> (i32, i32, i32, i32, i32, i32) {
    %c0_i32 = arith.constant 0 : i32
    %c0_i32_0 = arith.constant 0 : i32
    %c0_i32_1 = arith.constant 0 : i32
    %c0_i32_2 = arith.constant 0 : i32
    %c0_i32_3 = arith.constant 0 : i32
    return %arg0, %arg1, %c0_i32, %c0_i32_0, %c0_i32_1, %c0_i32_2 : i32, i32, i32, i32, i32, i32
  }
  func.func @transform_1(%arg0: i32, %arg1: i32) -> (i32, i32, i32) {
    %c0_i32 = arith.constant 0 : i32
    %c0_i32_0 = arith.constant 0 : i32
    return %arg0, %arg1, %c0_i32 : i32, i32, i32
  }
}

</mosaic_0001>

<bundles_post_ra>
// kernel: high_pass_filter.1
= control target key start
LH: loop header
LB: loop body
LE: loop exit
PB: predicated region body
PF: predicated region fallthrough
CT: control target
= control target key end

     0   :  { %s173_s25 = smov 120   ;;  %s174_s26 = smov 104   ;;  %vm144_vm0 = vcmask 523264   ;;  %s263_s0 = inlined_call_operand.vmem [shape: f32[1,1,2,2,13,104], index: 0, kind: input, shape index: {}]   ;;  %s264_s1 = inlined_call_operand.vmem [shape: f32[1,8,64], index: 1, kind: output, shape index: {}]  }
   0x1   :  { %v8_v0 = vld [vmem:[%s263_s0] sm:$0xff]  ;;  %v150_v13 = vld [vmem:[%s263_s0 + $0x10] sm:$0xff]  ;;  %s175_s27 = smov 88   ;;  %s176_s28 = smov 112  }
   0x2   :  { %v10_v1 = vld [vmem:[%s263_s0 + $0x1] sm:$0xff]  ;;  %v9_v3 = vmul.f32 0.015404109, %v8_v0  ;;  %v151_v16 = vld [vmem:[%s263_s0 + $0x11] sm:$0xff]  ;;  %v27_v17 = vmul.f32 0.003490712, %v150_v13 }
   0x3   :  { %v13_v2 = vld [vmem:[%s263_s0 + $0x2] sm:$0xff]  ;;  %v11_v4 = vmul.f32 -0.117990114, %v10_v1  ;;  %v152_v25 = vld [vmem:[%s263_s0 + $0x12] sm:$0xff]  ;;  %v30_v29 = vmul.f32 -0.048311744, %v151_v16 }
   0x4   :  { %v14_v5 = vmul.f32 0.49105594, %v13_v2  ;;  %v16_v6 = vld [vmem:[%s263_s0 + $0x3] sm:$0xff]  ;;  %v153_v32 = vld [vmem:[%s263_s0 + $0x13] sm:$0xff]  ;;  %v33_v35 = vmul.f32 0.78764117, %v152_v25 }
   0x5   :  { %v19_v7 = vld [vmem:[%s263_s0 + $0x4] sm:$0xff]  ;;  %v12_v8 = vadd.f32 %v11_v4, %v9_v3  ;;  %v17_v9 = vmul.f32 0.33792943, %v16_v6  ;;  %v154_v38 = vld [vmem:[%s263_s0 + $0x14] sm:$0xff]  ;;  %v36_v41 = vmul.f32 -0.07263752, %v153_v32 }
   0x6   :  { %v22_v10 = vld [vmem:[%s263_s0 + $0x5] sm:$0xff]  ;;  %v20_v12 = vmul.f32 -0.021060292, %v19_v7  ;;  %v162_v39 = vld [vmem:[%s263_s0 + $0x30] sm:$0xff]  ;;  %v39_v47 = vmul.f32 0.0447249, %v154_v38 }
   0x7   :  { %v15_v11 = vadd.f32 %v14_v5, %v12_v8  ;;  %v23_v15 = vmul.f32 0.0017677118, %v22_v10  ;;  %v156_v18 = vld [vmem:[%s263_s0 + $0x20] sm:$0xff]  ;;  %v155_v44 = vld [vmem:[%s263_s0 + $0x15] sm:$0xff]  ;;  %v95_v49 = vmul.f32 0.003490712, %v162_v39 }
   0x8   :  { %v157_v19 = vld [vmem:[%s263_s0 + $0x21] sm:$0xff]  ;;  %v77_v22 = vmul.f32 0.015404109, %v156_v18  ;;  %v163_v45 = vld [vmem:[%s263_s0 + $0x31] sm:$0xff]  ;;  %v42_v52 = vmul.f32 -0.0078007085, %v155_v44 }
   0x9   :  { %v18_v14 = vadd.f32 %v17_v9, %v15_v11  ;;  %v158_v20 = vld [vmem:[%s263_s0 + $0x22] sm:$0xff]  ;;  %v79_v23 = vmul.f32 -0.117990114, %v157_v19  ;;  %v164_v50 = vld [vmem:[%s263_s0 + $0x32] sm:$0xff]  ;;  %v98_v54 = vmul.f32 -0.048311744, %v163_v45 }
   0xa   :  { %v82_v24 = vmul.f32 0.49105594, %v158_v20  ;;  %v159_v26 = vld [vmem:[%s263_s0 + $0x23] sm:$0xff]  ;;  %v165_v55 = vld [vmem:[%s263_s0 + $0x33] sm:$0xff]  ;;  %v101_v58 = vmul.f32 0.78764117, %v164_v50 }
   0xb   :  { %v21_v21 = vadd.f32 %v20_v12, %v18_v14  ;;  %v160_v27 = vld [vmem:[%s263_s0 + $0x24] sm:$0xff]  ;;  %v80_v30 = vadd.f32 %v79_v23, %v77_v22  ;;  %v85_v31 = vmul.f32 0.33792943, %v159_v26  ;;  %v166_v59 = vld [vmem:[%s263_s0 + $0x34] sm:$0xff]  ;;  %v104_v62 = vmul.f32 -0.07263752, %v165_v55 }
   0xc   :  { %v161_v33 = vld [vmem:[%s263_s0 + $0x25] sm:$0xff]  ;;  %v88_v37 = vmul.f32 -0.021060292, %v160_v27  ;;  %v107_v63 = vmul.f32 0.0447249, %v166_v59  ;;  %v167_v3 = vld [vmem:[%s263_s0 + $0x35] sm:$0xff] }
   0xd   :  { %v24_v28 = vadd.f32 %v23_v15, %v21_v21  ;;  %v83_v36 = vadd.f32 %v82_v24, %v80_v30  ;;  %v91_v43 = vmul.f32 0.0017677118, %v161_v33  ;;  %v110_v6 = vmul.f32 -0.0078007085, %v167_v3  ;;  %s177_s29 = smov 96  }
   0xf   :  { %v28_v34 = vadd.f32 %v27_v17, %v24_v28  ;;  %v86_v42 = vadd.f32 %v85_v31, %v83_v36 }
  0x11   :  { %v31_v40 = vadd.f32 %v30_v29, %v28_v34  ;;  %v89_v48 = vadd.f32 %v88_v37, %v86_v42 }
  0x13   :  { %v34_v46 = vadd.f32 %v33_v35, %v31_v40  ;;  %v92_v53 = vadd.f32 %v91_v43, %v89_v48 }
  0x15   :  { %v37_v51 = vadd.f32 %v36_v41, %v34_v46  ;;  %v96_v57 = vadd.f32 %v95_v49, %v92_v53 }
  0x17   :  { %v40_v56 = vadd.f32 %v39_v47, %v37_v51  ;;  %v99_v61 = vadd.f32 %v98_v54, %v96_v57 }
  0x19   :  { %v43_v60 = vadd.f32 %v42_v52, %v40_v56  ;;  %v102_v2 = vadd.f32 %v101_v58, %v99_v61 }
  0x1b   :  { %v45_v0 = vmul.f32 -0.117990114, %v43_v60  ;;  %v57_v1 = vmul.f32 0.33792943, %v43_v60  ;;  %v69_v4 = vmul.f32 0.0017677118, %v43_v60  ;;  %v105_v5 = vadd.f32 %v104_v62, %v102_v2 }
  0x1c   :  { %v51_v8 = vmul.f32 0.49105594, %v43_v60  ;;  %v63_v9 = vmul.f32 -0.021060292, %v43_v60  ;;  %v44_v19 = vmul.f32 0.015404109, %v43_v60 }
  0x1d   :  { %47 = vrot.lane.b32.xlu0 %v45_v0, %s173_s25  ;;  %59 = vrot.lane.b32.xlu1 %v57_v1, %s174_s26  ;;  %v108_v7 = vadd.f32 %v107_v63, %v105_v5 }
  0x1e   :  { %71 = vrot.lane.b32.xlu2 %v69_v4, %s175_s27 }
  0x1f   :  { %v111_v10 = vadd.f32 %v110_v6, %v108_v7 }
  0x21   :  { %v114_v11 = vmul.f32 -0.048311744, %v111_v10  ;;  %v120_v12 = vmul.f32 0.78764117, %v111_v10  ;;  %v126_v13 = vmul.f32 -0.07263752, %v111_v10 }
  0x22   :  { %v132_v14 = vmul.f32 0.0447249, %v111_v10  ;;  %v138_v15 = vmul.f32 -0.0078007085, %v111_v10  ;;  %v112_v27 = vmul.f32 0.003490712, %v111_v10 }
  0x25   :  { %53 = vrot.lane.b32.xlu0 %v51_v8, %s176_s28  ;;  %65 = vrot.lane.b32.xlu1 %v63_v9, %s177_s29 }
  0x26   :  { %116 = vrot.lane.b32.xlu2 %v114_v11, %s173_s25 }
  0x2d   :  { %122 = vrot.lane.b32.xlu0 %v120_v12, %s176_s28  ;;  %128 = vrot.lane.b32.xlu1 %v126_v13, %s174_s26 }
  0x2e   :  { %134 = vrot.lane.b32.xlu2 %v132_v14, %s177_s29 }
  0x35   :  { %140 = vrot.lane.b32.xlu0 %v138_v15, %s175_s27 }
  0x78   :  { %v72_v18 = vpop.permute.xlu2 %71 }
  0x80   :  { %v117_v25 = vpop.permute.xlu2 %116 }
  0x88   :  { %v135_v34 = vpop.permute.xlu2 %134 }
  0x8f   :  { %v48_v16 = vpop.permute.xlu0 %47  ;;  %v60_v17 = vpop.permute.xlu1 %59 }
  0x90   :  { %v50_v20 = vadd.f32 %v48_v16, %v44_v19 }
  0x97   :  { %v54_v21 = vpop.permute.xlu0 %53  ;;  %v66_v23 = vpop.permute.xlu1 %65 }
  0x98   :  { %v56_v22 = vadd.f32 %v54_v21, %v50_v20 }
  0x9a   :  { %v62_v24 = vadd.f32 %v60_v17, %v56_v22 }
  0x9c   :  { %v68_v26 = vadd.f32 %v66_v23, %v62_v24 }
  0x9e   :  { %v74_v28 = vadd.f32 %v72_v18, %v68_v26 }
  0x9f   :  { %v123_v29 = vpop.permute.xlu0 %122  ;;  %v129_v32 = vpop.permute.xlu1 %128 }
  0xa0   :  { %v113_v30 = vadd.f32 %v112_v27, %v74_v28 }
  0xa2   :  { %v119_v31 = vadd.f32 %v117_v25, %v113_v30 }
  0xa4   :  { %v125_v33 = vadd.f32 %v123_v29, %v119_v31 }
  0xa6   :  { %v131_v35 = vadd.f32 %v129_v32, %v125_v33 }
  0xa7   :  { %v141_v36 = vpop.permute.xlu0 %140 }
  0xa8   :  { %v137_v37 = vadd.f32 %v135_v34, %v131_v35 }
  0xaa   :  { %v143_v38 = vadd.f32 %v141_v36, %v137_v37 }
  0xac   :  { %145 = vst.msk [vmem:[%s264_s1] sm:$0xff] %vm144_vm0, %v143_v38 }

</bundles_post_ra>
